<compile_context>
chip_gen: v6e
topology: v6e:2x2x1
jax: 0.10.0
libtpu: 0.0.40
codegen_flags: <defaults>
</compile_context>

<pallas_src>
import math
import numpy as np
import jax
import jax.numpy as jnp
from jax.experimental import pallas as pl
from jax.experimental.pallas import tpu as pltpu


def _conv_transpose_matmul_kernel(p_ref, w_ref, b_ref, o_ref):
    # p_ref: (1, K, TM) bf16 im2col patches (K = KH*KW*Ci taps, TM output pixels on lanes)
    # w_ref: (Co, K)    bf16 flattened flipped kernel
    # b_ref: (Co, 1)    f32 bias
    # o_ref: (Co, TM)   f32 lane-dense output tile
    acc = jnp.dot(w_ref[...], p_ref[0], preferred_element_type=jnp.float32)
    o_ref[...] = acc + b_ref[...]


def _pick_tm(m, cap=2048):
    """Largest lane tile <= cap that divides M (multiple of 128 if possible)."""
    if m <= cap:
        return m
    for t in range(cap - cap % 128, 127, -128):
        if m % t == 0:
            return t
    return m  # fallback: full M (always legal via full-dim BlockSpec exception)


def conv_transpose2d_pallas(x_nchw, weight, bias, *, stride, padding, output_padding):
    """PyTorch-semantics ConvTranspose2d forward.

    x_nchw: (N, Ci, H, W); weight: (Ci, Co, KH, KW); bias: (Co,)
    Returns (N, Co, OH, OW) with OH = (H-1)*stride - 2*padding + KH + output_padding.
    """
    N, Ci, H, W = x_nchw.shape
    _, Co, KH, KW = weight.shape
    # TODO(synk): add output-crop path for padding > kernel_size - 1
    assert padding <= KH - 1 and padding <= KW - 1
    assert output_padding < stride or output_padding == 0

    OH = (H - 1) * stride - 2 * padding + KH + output_padding
    OW = (W - 1) * stride - 2 * padding + KW + output_padding
    M = OH * OW
    K = KH * KW * Ci

    # --- XLA glue: zero-dilate + pad + im2col, all in NC(HW) layout, bf16 ---
    x = x_nchw.astype(jnp.bfloat16)
    Hd = (H - 1) * stride + 1
    Wd = (W - 1) * stride + 1
    xd = jnp.zeros((N, Ci, Hd, Wd), jnp.bfloat16).at[:, :, ::stride, ::stride].set(x)
    ph, pw = KH - 1 - padding, KW - 1 - padding
    xp = jnp.pad(
        xd, ((0, 0), (0, 0), (ph, ph + output_padding), (pw, pw + output_padding))
    )

    # patches[n, (kh*KW+kw)*Ci + ci, oh*OW + ow] = xp[n, ci, oh+kh, ow+kw]
    wins = [xp[:, :, kh:kh + OH, kw:kw + OW] for kh in range(KH) for kw in range(KW)]
    patches = jnp.stack(wins, axis=1).reshape(N, K, M)  # (N, K, M), M on lanes

    # flipped kernel flattened to match the patches' (tap, ci) order:
    # w_lhs[co, (kh*KW+kw)*Ci + ci] = weight[ci, co, KH-1-kh, KW-1-kw]
    w_lhs = (
        jnp.transpose(weight[:, :, ::-1, ::-1], (1, 2, 3, 0))
        .reshape(Co, K)
        .astype(jnp.bfloat16)
    )
    b2 = bias.astype(jnp.float32).reshape(Co, 1)

    TM = _pick_tm(M)
    n_mt = M // TM

    cost = pl.CostEstimate(
        flops=2 * N * M * K * Co,
        transcendentals=0,
        bytes_accessed=patches.size * 2 + w_lhs.size * 2 + b2.size * 4 + N * Co * M * 4,
    )

    out = pl.pallas_call(
        _conv_transpose_matmul_kernel,
        out_shape=jax.ShapeDtypeStruct((N * Co, M), jnp.float32),
        grid=(N, n_mt),
        in_specs=[
            pl.BlockSpec((1, K, TM), lambda n, j: (n, 0, j)),
            pl.BlockSpec((Co, K), lambda n, j: (0, 0)),
            pl.BlockSpec((Co, 1), lambda n, j: (0, 0)),
        ],
        out_specs=pl.BlockSpec((Co, TM), lambda n, j: (n, j)),
        compiler_params=pltpu.CompilerParams(
            dimension_semantics=("parallel", "parallel"),
            vmem_limit_bytes=32 * 1024 * 1024,
        ),
        cost_estimate=cost,
    )(patches, w_lhs, b2)

    # (N*Co, OH*OW) reshapes straight into NCHW — no transpose needed.
    return out.reshape(N, Co, OH, OW)


def _ref_conv_transpose(x, w, b, stride, padding, output_padding):
    """Slow numpy reference with exact ConvTranspose2d scatter-add semantics."""
    x = np.asarray(x); w = np.asarray(w); b = np.asarray(b)
    N, Ci, H, W = x.shape
    _, Co, KH, KW = w.shape
    OH = (H - 1) * stride - 2 * padding + KH + output_padding
    OW = (W - 1) * stride - 2 * padding + KW + output_padding
    out = np.zeros((N, Co, OH, OW), np.float32)
    for n in range(N):
        for ci in range(Ci):
            for h in range(H):
                for ww in range(W):
                    for kh in range(KH):
                        for kw in range(KW):
                            oh = h * stride - padding + kh
                            ow = ww * stride - padding + kw
                            if 0 <= oh < OH and 0 <= ow < OW:
                                out[n, :, oh, ow] += x[n, ci, h, ww] * w[ci, :, kh, kw]
    return out + b[None, :, None, None]


if __name__ == "__main__":
    # InverseBlock(in_channels=4, out_channels=8, kernel_size=4, stride=2, padding=1)
    N, Ci, Co = 2, 4, 8
    H = W = 16
    K_SZ, STRIDE, PAD, OUT_PAD = 4, 2, 1, 0

    key = jax.random.PRNGKey(0)
    kx, kw_, kb = jax.random.split(key, 3)

    x = jax.random.normal(kx, (N, Ci, H, W), jnp.float32)

    # kaiming_uniform_ (a=0, fan_in mode): fan_in = weight.size(1)*KH*KW = Co*KH*KW
    fan_in = Co * K_SZ * K_SZ
    w_bound = math.sqrt(6.0 / fan_in)
    weight = jax.random.uniform(kw_, (Ci, Co, K_SZ, K_SZ), jnp.float32, -w_bound, w_bound)
    # default ConvTranspose2d bias init: U(-1/sqrt(fan_in), 1/sqrt(fan_in))
    b_bound = 1.0 / math.sqrt(fan_in)
    bias = jax.random.uniform(kb, (Co,), jnp.float32, -b_bound, b_bound)

    y = conv_transpose2d_pallas(
        x, weight, bias, stride=STRIDE, padding=PAD, output_padding=OUT_PAD
    )
    y = jax.block_until_ready(y)

    # Reference computed from bf16-rounded operands (the kernel feeds the MXU in
    # bf16 and accumulates in f32), so the comparison isolates the kernel math.
    x_q = np.asarray(x.astype(jnp.bfloat16).astype(jnp.float32))
    w_q = np.asarray(weight.astype(jnp.bfloat16).astype(jnp.float32))
    y_ref = _ref_conv_transpose(x_q, w_q, np.asarray(bias), STRIDE, PAD, OUT_PAD)
    np.testing.assert_allclose(np.asarray(y), y_ref, rtol=1e-3, atol=1e-3)
    print("KERNEL_OK")
</pallas_src>

<mosaic_0001>
module attributes {stable_mosaic.version = 11 : i64} {
  func.func @_conv_transpose_matmul_kernel(%arg0: i32, %arg1: i32, %arg2: memref<1x64x1024xbf16, #tpu.memory_space<vmem>>, %arg3: memref<8x64xbf16, #tpu.memory_space<vmem>>, %arg4: memref<8x1xf32, #tpu.memory_space<vmem>>, %arg5: memref<8x1024xf32, #tpu.memory_space<vmem>>) attributes {dimension_semantics = [#tpu.dimension_semantics<parallel>, #tpu.dimension_semantics<parallel>], iteration_bounds = array<i64: 2, 1>, scalar_prefetch = 0 : i64, scratch_operands = 0 : i64, tpu.core_type = #tpu.core_type<tc>, window_params = [{transform_indices = @transform_0, window_bounds = array<i64: 1, 64, 1024>}, {pipeline_mode = #tpu.pipeline_mode<synchronous>, transform_indices = @transform_1, window_bounds = array<i64: 8, 64>}, {pipeline_mode = #tpu.pipeline_mode<synchronous>, transform_indices = @transform_2, window_bounds = array<i64: 8, 1>}, {transform_indices = @transform_3, window_bounds = array<i64: 8, 1024>}]} {
    %c0 = arith.constant 0 : index
    %c0_0 = arith.constant 0 : index
    %0 = vector.load %arg3[%c0, %c0_0] : memref<8x64xbf16, #tpu.memory_space<vmem>>, vector<8x64xbf16>
    %c0_1 = arith.constant 0 : index
    %c0_2 = arith.constant 0 : index
    %c0_3 = arith.constant 0 : index
    %1 = vector.load %arg2[%c0_1, %c0_2, %c0_3] : memref<1x64x1024xbf16, #tpu.memory_space<vmem>>, vector<1x64x1024xbf16>
    %2 = vector.shape_cast %1 : vector<1x64x1024xbf16> to vector<64x1024xbf16>
    %cst = arith.constant dense<0.000000e+00> : vector<8x1024xf32>
    %3 = tpu.matmul %0, %2, %cst {dimension_numbers = #tpu.dot_dimension_numbers<[1], [0], [0], [1], [0, 0, 1, 1], [], []>} : vector<8x64xbf16>, vector<64x1024xbf16>, vector<8x1024xf32> -> vector<8x1024xf32>
    %c0_4 = arith.constant 0 : index
    %c0_5 = arith.constant 0 : index
    %4 = vector.load %arg4[%c0_4, %c0_5] : memref<8x1xf32, #tpu.memory_space<vmem>>, vector<8x1xf32>
    %5 = vector.broadcast %4 : vector<8x1xf32> to vector<8x1024xf32>
    %6 = arith.addf %3, %5 : vector<8x1024xf32>
    %c0_6 = arith.constant 0 : index
    %c0_7 = arith.constant 0 : index
    %7 = vector.load %arg5[%c0_6, %c0_7] : memref<8x1024xf32, #tpu.memory_space<vmem>>, vector<8x1024xf32>
    tpu.vector_store %arg5[%c0_6, %c0_7], %6 {strides = array<i32>} : memref<8x1024xf32, #tpu.memory_space<vmem>>, vector<8x1024xf32>,
    return
  }
  func.func @transform_0(%arg0: i32, %arg1: i32) -> (i32, i32, i32) {
    %c0_i32 = arith.constant 0 : i32
    %c0_i32_0 = arith.constant 0 : i32
    return %arg0, %c0_i32, %arg1 : i32, i32, i32
  }
  func.func @transform_1(%arg0: i32, %arg1: i32) -> (i32, i32) {
    %c0_i32 = arith.constant 0 : i32
    %c0_i32_0 = arith.constant 0 : i32
    %c0_i32_1 = arith.constant 0 : i32
    return %c0_i32, %c0_i32_0 : i32, i32
  }
  func.func @transform_2(%arg0: i32, %arg1: i32) -> (i32, i32) {
    %c0_i32 = arith.constant 0 : i32
    %c0_i32_0 = arith.constant 0 : i32
    %c0_i32_1 = arith.constant 0 : i32
    return %c0_i32, %c0_i32_0 : i32, i32
  }
  func.func @transform_3(%arg0: i32, %arg1: i32) -> (i32, i32) {
    %c0_i32 = arith.constant 0 : i32
    return %arg0, %arg1 : i32, i32
  }
}

</mosaic_0001>

<bundles_post_ra>
// kernel: tpu_custom_call.1
= control target key start
LH: loop header
LB: loop body
LE: loop exit
PB: predicated region body
PF: predicated region fallthrough
CT: control target
= control target key end

     0   :  { %8 = vsyncpa [#allocation3], 0  ;;  %s1134_s0 = inlined_call_operand.hbm [shape: bf16[2,64,1024], index: 0, kind: input, shape index: {}]   ;;  %s1135_s1 = inlined_call_operand.vmem [shape: bf16[8,64], index: 1, kind: input, shape index: {}]   ;;  %s1136_s2 = inlined_call_operand.vmem [shape: f32[8,1], index: 2, kind: input, shape index: {}]   ;;  %s1137_s3 = inlined_call_operand.hbm [shape: f32[16,1024], index: 3, kind: output, shape index: {}]  }
   0x1   :  { %10 = vsyncpa [#allocation3 + $0x1], 0 }
   0x2   :  { %11 = vsyncpa [#allocation4], 0 }
   0x3   :  { %13 = vsyncpa [#allocation4 + $0x1], 0  ;;  %s940_s12 = smov 0   ;;  %s942_s13 = smov 0  }
   0x4   :  { %s944_s14 = smov 0   ;;  %s946_s15 = smov 0  }
   0x5   :  { %s948_s16 = smov 0   ;;  %s950_s17 = smov 0  }
   0x6 LB: > { %s686_s18 = sadd.s32 4294967295, %s913_s17   ;;  %s687_s19 = sadd.s32 4294967294, %s913_s17   ;;  %s913_s17 = sphi %s950_s17, %s19_s17   ;;  %s909_s16 = sphi %s948_s16, %s1148_s16   ;;  %s905_s15 = sphi %s946_s15, %s1147_s15   ;;  %s901_s14 = sphi %s944_s14, %s1146_s14   ;;  %s897_s13 = sphi %s942_s13, %s1145_s13   ;;  %s893_s12 = sphi %s940_s12, %s1144_s12  }
   0x7   : > { %s31_s20 = sadd.s32 1, %s909_s16  ;;  %s40_s21 = sadd.s32 1, %s901_s14 }
   0x8   : > { %p33_p0 = scmp.ge.s32.totalorder %s31_s20, 2  ;;  %p47_p1 = scmp.ne.s32.totalorder %s901_s14, %s897_s13 }
   0x9   : > { %p48_p2 = scmp.eq.s32.totalorder %s913_s17, 0  ;;  %p53_p3 = scmp.ne.s32.totalorder %s897_s13, %s893_s12 }
   0xa   : > { %s1150_s20 = smov (%p33_p0, %s31_s20), 0  ;;  %p54_p5 = scmp.eq.s32.totalorder %s686_s18, 0 }
   0xb   : > { %p981_p4 = por %p48_p2, %p47_p1  ;;  %s35_s23 = ssub.s32 %s909_s16, %s1150_s20 }
   0xc   : > { %p121_p6 = scmp.eq.s32.totalorder %s686_s18, 1  ;;  %p38_p7 = scmp.eq.s32.totalorder %s35_s23, 0 }
   0xd   : > { %p987_p8 = por %p54_p5, %p53_p3  ;;  %p127_p10 = scmp.eq.s32.totalorder %s687_s19, 1 }
   0xe   : > { %p991_p9 = por %p121_p6, %p47_p1  ;;  %p751_p13 = scmp.lt.s32.totalorder %s913_s17, 2 }
   0xf   : > { %s996_s26 = scalar_select %p38_p7, %s901_s14, %s40_s21  }
  0x10   : > { %p998_p11 = por %p127_p10, %p53_p3  ;;  %s153_s28 = sand.u32 1, %s901_s14  }
  0x11   : > { %s690_s29 = sshll.u32 %s153_s28, 8  ;;  %s737_s30 = sshll.u32 %s909_s16, 12 }
  0x12   : > { %s165_s6 = scalar_lea.hbm %s1134_s0, %s737_s30  ;;  %s157_s7 = scalar_lea.vmem [#allocation2], %s690_s29 }
  0x13   : > { %s166_s8 = sshll.u32 %s157_s7, 4  ;;  %p1011_p0 = pnand %p751_p13, %p981_p4  ;;  %s167_s8 = int_to_ptr.vmem [resolvable:$true] %s166_s8 }
  0x14   : > { %p693_p1 = scmp.ge.s32.totalorder %s913_s17, 1  ;;  %s154_s10 = scalar_lea.sflag [#allocation3], %s153_s28 }
  0x15   : > { %p807_p2 = pneg %p1011_p0  ;;  %s818_s11 = scalar_lea.vmem %s167_s8, 4096 }
  0x16   : > { %p819_p3 = scmp.ne.s32.totalorder %s167_s8, %s818_s11  ;;  %s915_s18 = smov [#allocation2]  }
  0x17   : > { %s823_s19 = sshll.u32 %s915_s18, 4  ;;  %s824_s19 = int_to_ptr.vmem [resolvable:$false] %s823_s19 }
  0x18   : > { %p821_p5 = pnand %p819_p3, %p807_p2  ;;  %s825_s21 = scalar_lea.vmem %s824_s19, 8192 }
  0x19   : > { %p826_p7 = scmp.lt.s32.totalorder %s167_s8, %s824_s19  ;;  %p827_p10 = scmp.lt.s32.totalorder %s825_s21, %s818_s11 }
  0x1a   : > { %p822_p6 = pneg %p821_p5 }
  0x1b   : > { %p828_p12 = por %p827_p10, %p826_p7 }
  0x1d   : > { %p829_p4 = pnand %p828_p12, %p822_p6 }
  0x1f   : > { %832 = shalt.err (!%p829_p4)
}
  0x20   : > { %s916_s22 = smov 512   ;;  %s917_s23 = smov 32  }
  0x21   : > { %746 = dma.hbm_to_vmem [thread:$0]  (!%p1011_p0), %s165_s6, 4096, %s167_s8, %s154_s10, %s916_s22, %s916_s22, %s917_s23  }
  0x22   : > { %p174_p13 = scmp.lt.s32.totalorder %s913_s17, 3 }
  0x24   : > { %p175_p2 = pnand %p693_p1, %p174_p13 }
  0x25   : > { %s1024_s28 = sand.u32 (!%p175_p2), 1, %s897_s13  }
  0x26   : > { %178 = sbr.rel (%p175_p2) target bundleno = 291 (0x123), region = 32  ;;  %s694_s29 = sshll.u32 (!%p175_p2), %s1024_s28, 8 }
  0x27   : > { %s181_s30 = scalar_lea.sflag (!%p175_p2), [#allocation3], %s1024_s28  ;;  %s1028_s4 = scalar_lea.vmem (!%p175_p2), [#allocation2], %s694_s29 }
  0x2b   : > { %884 = dma.done.wait (%p987_p8), %s181_s30, 4096  }
  0x2c   : > { %886 = vsyncadd (%p987_p8), %s181_s30, 4294963200  ;;  %v918_v0 = vmov 0   ;;  %v235_v1 = vld [vmem:[%s1028_s4 + $0xc0] sm:$0xff]  ;;  %v236_v3 = vld [vmem:[%s1028_s4 + $0xc8] sm:$0xff]  ;;  %vm409_vm0 = vcmask 523264   ;;  %s695_s8 = sshll.u32 %s1024_s28, 6 }
  0x2d   : > { %445 = vmatprep.mubr.bf16.mxu0 %v918_v0  ;;  %486 = vmatprep.mubr.bf16.mxu1 %v918_v0  ;;  %v239_v2 = vld [vmem:[%s1028_s4 + $0xe0] sm:$0xff]  ;;  %v240_v5 = vld [vmem:[%s1028_s4 + $0xe8] sm:$0xff]  ;;  %v237_v31 = vld [vmem:[%s1028_s4 + $0xd0] sm:$0xff]  ;;  %s206_s9 = scalar_lea.vmem [#allocation5], %s695_s8  ;;  %s738_s10 = sshll.u32 %s905_s15, 10 }
  0x2e   : > { %804 = vset.pattern.permute.xlu0 %v918_v0  ;;  %v721_v4 = vcombine.high %v235_v1, %v239_v2  ;;  %v720_v6 = vcombine.low %v235_v1, %v239_v2  ;;  %v227_v7 = vld [vmem:[%s1028_s4 + $0x80] sm:$0xff]  ;;  %v723_v9 = vcombine.high %v236_v3, %v240_v5  ;;  %v722_v10 = vcombine.low %v236_v3, %v240_v5  ;;  %v228_v12 = vld [vmem:[%s1028_s4 + $0x88] sm:$0xff]  ;;  %v241_v32 = vld [vmem:[%s1028_s4 + $0xf0] sm:$0xff]  ;;  %s602_s11 = sshll.u32 %s206_s9, 4  ;;  %s1086_s21 = scalar_lea.hbm %s1137_s3, %s738_s10  ;;  %s1088_s11 = int_to_ptr.vmem [resolvable:$true] %s602_s11 }
  0x2f   : > { %v231_v8 = vld [vmem:[%s1028_s4 + $0xa0] sm:$0xff]  ;;  %v232_v13 = vld [vmem:[%s1028_s4 + $0xa8] sm:$0xff]  ;;  %v238_v33 = vld [vmem:[%s1028_s4 + $0xd8] sm:$0xff]  ;;  %v725_v38 = vcombine.high %v237_v31, %v241_v32  ;;  %v724_v45 = vcombine.low %v237_v31, %v241_v32  ;;  %s586_s15 = scalar_lea.sflag [#allocation4], %s1024_s28  ;;  %s833_s22 = scalar_lea.vmem %s1088_s11, 1024 }
  0x30   : > { %v713_v11 = vcombine.high %v227_v7, %v231_v8  ;;  %v219_v14 = vld [vmem:[%s1028_s4 + $0x40] sm:$0xff]  ;;  %421 = vmatprep.subr.bf16.mxu0 %v721_v4  ;;  %v715_v15 = vcombine.high %v228_v12, %v232_v13  ;;  %v220_v17 = vld [vmem:[%s1028_s4 + $0x48] sm:$0xff]  ;;  %462 = vmatprep.subr.bf16.mxu1 %v723_v9  ;;  %v712_v19 = vcombine.low %v227_v7, %v231_v8  ;;  %v242_v34 = vld [vmem:[%s1028_s4 + $0xf8] sm:$0xff]  ;;  %p834_p8 = scmp.ne.s32.totalorder %s1088_s11, %s833_s22  ;;  %s919_s23 = smov [#allocation5]  }
  0x31   : > { %v223_v16 = vld [vmem:[%s1028_s4 + $0x60] sm:$0xff]  ;;  %v224_v18 = vld [vmem:[%s1028_s4 + $0x68] sm:$0xff]  ;;  %422 = vmatpush1.bf16.msra.mxu0 %v720_v6  ;;  %463 = vmatpush1.bf16.msra.mxu1 %v722_v10  ;;  %v714_v20 = vcombine.low %v228_v12, %v232_v13  ;;  %v727_v39 = vcombine.high %v238_v33, %v242_v34  ;;  %v229_v40 = vld [vmem:[%s1028_s4 + $0x90] sm:$0xff]  ;;  %v726_v46 = vcombine.low %v238_v33, %v242_v34  ;;  %s837_s29 = sshll.u32 %s919_s23, 4  ;;  %s838_s29 = int_to_ptr.vmem [resolvable:$false] %s837_s29 }
  0x32   : > { %423 = vmatprep.subr.bf16.mxu0 %v713_v11  ;;  %v705_v21 = vcombine.high %v219_v14, %v223_v16  ;;  %464 = vmatprep.subr.bf16.mxu1 %v715_v15  ;;  %v707_v22 = vcombine.high %v220_v17, %v224_v18  ;;  %v211_v23 = vld [vmem:[%s1028_s4] sm:$0xff]  ;;  %v212_v25 = vld [vmem:[%s1028_s4 + $0x8] sm:$0xff]  ;;  %v704_v27 = vcombine.low %v219_v14, %v223_v16  ;;  %v233_v41 = vld [vmem:[%s1028_s4 + $0xb0] sm:$0xff]  ;;  %p835_p12 = pnand %p834_p8, %p991_p9  ;;  %s839_s30 = scalar_lea.vmem %s838_s29, 2048 }
  0x33   : > { %v215_v24 = vld [vmem:[%s1028_s4 + $0x20] sm:$0xff]  ;;  %v216_v26 = vld [vmem:[%s1028_s4 + $0x28] sm:$0xff]  ;;  %v706_v28 = vcombine.low %v220_v17, %v224_v18  ;;  %v230_v42 = vld [vmem:[%s1028_s4 + $0x98] sm:$0xff]  ;;  %v717_v47 = vcombine.high %v229_v40, %v233_v41  ;;  %v716_v53 = vcombine.low %v229_v40, %v233_v41  ;;  %p840_p1 = scmp.lt.s32.totalorder %s1088_s11, %s838_s29  ;;  %p841_p3 = scmp.lt.s32.totalorder %s839_s30, %s833_s22 }
  0x34   : > { %v697_v29 = vcombine.high %v211_v23, %v215_v24  ;;  %v699_v30 = vcombine.high %v212_v25, %v216_v26  ;;  %v243_v35 = vld [vmem:[%s1136_s2] sm:$0xff]  ;;  %v696_v36 = vcombine.low %v211_v23, %v215_v24  ;;  %v698_v37 = vcombine.low %v212_v25, %v216_v26  ;;  %v234_v43 = vld [vmem:[%s1028_s4 + $0xb8] sm:$0xff]  ;;  %v221_v49 = vld [vmem:[%s1028_s4 + $0x50] sm:$0xff]  ;;  %p836_p0 = pneg %p835_p12 }
  0x35   : > { %424 = vmatpush1.bf16.msra.mxu0 %v712_v19  ;;  %465 = vmatpush1.bf16.msra.mxu1 %v714_v20  ;;  %v210_v44 = vld [vmem:[%s1135_s1] sm:$0xf]  ;;  %v719_v48 = vcombine.high %v230_v42, %v234_v43  ;;  %v225_v50 = vld [vmem:[%s1028_s4 + $0x70] sm:$0xff]  ;;  %v222_v51 = vld [vmem:[%s1028_s4 + $0x58] sm:$0xff]  ;;  %v718_v54 = vcombine.low %v230_v42, %v234_v43  ;;  %p842_p5 = por %p841_p3, %p840_p1 }
  0x36   : > { %425 = vmatprep.subr.bf16.mxu0 %v705_v21  ;;  %466 = vmatprep.subr.bf16.mxu1 %v707_v22  ;;  %v226_v52 = vld [vmem:[%s1028_s4 + $0x78] sm:$0xff]  ;;  %v709_v55 = vcombine.high %v221_v49, %v225_v50  ;;  %v213_v57 = vld [vmem:[%s1028_s4 + $0x10] sm:$0xff]  ;;  %v708_v61 = vcombine.low %v221_v49, %v225_v50 }
  0x37   : > { %246 = vperm.xlu0 %804, %v243_v35   ;;  %v711_v56 = vcombine.high %v222_v51, %v226_v52  ;;  %v217_v58 = vld [vmem:[%s1028_s4 + $0x30] sm:$0xff]  ;;  %v214_v59 = vld [vmem:[%s1028_s4 + $0x18] sm:$0xff]  ;;  %v710_v62 = vcombine.low %v222_v51, %v226_v52  ;;  %p843_p6 = pnand %p842_p5, %p836_p0 }
  0x38   : > { %v218_v60 = vld [vmem:[%s1028_s4 + $0x38] sm:$0xff]  ;;  %v701_v63 = vcombine.high %v213_v57, %v217_v58  ;;  %v700_v2 = vcombine.low %v213_v57, %v217_v58 }
  0x39   : > { %426 = vmatpush1.bf16.msra.mxu0 %v704_v27  ;;  %467 = vmatpush1.bf16.msra.mxu1 %v706_v28  ;;  %v703_v1 = vcombine.high %v214_v59, %v218_v60  ;;  %v702_v3 = vcombine.low %v214_v59, %v218_v60 }
  0x3a   : > { %427 = vmatprep.subr.bf16.mxu0 %v697_v29  ;;  %468 = vmatprep.subr.bf16.mxu1 %v699_v30 }
  0x3d   : > { %428 = vmatpush1.bf16.msra.mxu0 %v696_v36  ;;  %469 = vmatpush1.bf16.msra.mxu1 %v698_v37 }
  0x3e   : > { %503 = vmatprep.subr.bf16.mxu0 %v725_v38  ;;  %544 = vmatprep.subr.bf16.mxu1 %v727_v39 }
  0x40   : > { %728 = vmatmul.mubr.msk.bf16.vlgmr.msra.gmra.mxu0 %vm409_vm0, %v210_v44  ;;  %729 = vmatmul.mubr.msk.bf16.vlgmr.msra.gmra.mxu1 %vm409_vm0, %v210_v44 }
  0x41   : > { %504 = vmatpush1.bf16.msra.mxu0 %v724_v45  ;;  %545 = vmatpush1.bf16.msra.mxu1 %v726_v46 }
  0x42   : > { %505 = vmatprep.subr.bf16.mxu0 %v717_v47  ;;  %546 = vmatprep.subr.bf16.mxu1 %v719_v48 }
  0x43   : > { %527 = vmatprep.mubr.bf16.mxu0 %v918_v0  ;;  %568 = vmatprep.mubr.bf16.mxu1 %v918_v0 }
  0x45   : > { %506 = vmatpush1.bf16.msra.mxu0 %v716_v53  ;;  %547 = vmatpush1.bf16.msra.mxu1 %v718_v54 }
  0x46   : > { %507 = vmatprep.subr.bf16.mxu0 %v709_v55  ;;  %548 = vmatprep.subr.bf16.mxu1 %v711_v56 }
  0x49   : > { %508 = vmatpush1.bf16.msra.mxu0 %v708_v61  ;;  %549 = vmatpush1.bf16.msra.mxu1 %v710_v62 }
  0x4a   : > { %509 = vmatprep.subr.bf16.mxu0 %v701_v63  ;;  %550 = vmatprep.subr.bf16.mxu1 %v703_v1 }
  0x4d   : > { %510 = vmatpush1.bf16.msra.mxu0 %v700_v2  ;;  %551 = vmatpush1.bf16.msra.mxu1 %v702_v3 }
  0x50   : > { %730 = vmatmul.mubr.msk.bf16.vlgmr.msra.gmra.mxu0 %vm409_vm0, %v210_v44  ;;  %731 = vmatmul.mubr.msk.bf16.vlgmr.msra.gmra.mxu1 %vm409_vm0, %v210_v44 }
  0xb2   : > { %v247_v0 = vpop.permute.xlu0 %246 }
 0x100   : > { %v447_v4 = vpop.f32.mrf.mxu0  ;;  %v488_v5 = vpop.f32.mrf.mxu1 }
 0x101   : > { %v448_v6 = vadd.f32 %v447_v4, %v247_v0  ;;  %v489_v7 = vadd.f32 %v488_v5, %v247_v0 }
 0x102   : > { %v449_v8 = vpop.f32.mrf.mxu0  ;;  %v490_v10 = vpop.f32.mrf.mxu1 }
 0x103   : > { %577 = vst [vmem:[%s206_s9] sm:$0xff] %v448_v6  ;;  %v450_v9 = vadd.f32 %v449_v8, %v247_v0  ;;  %579 = vst [vmem:[%s206_s9 + $0x10] sm:$0xff] %v489_v7  ;;  %v491_v11 = vadd.f32 %v490_v10, %v247_v0 }
 0x104   : > { %v451_v12 = vpop.f32.mrf.mxu0  ;;  %v492_v13 = vpop.f32.mrf.mxu1 }
 0x105   : > { %578 = vst [vmem:[%s206_s9 + $0x8] sm:$0xff] %v450_v9  ;;  %580 = vst [vmem:[%s206_s9 + $0x18] sm:$0xff] %v491_v11 }
 0x106   : > { %v452_v14 = vpop.f32.mrf.mxu0  ;;  %v493_v15 = vpop.f32.mrf.mxu1 }
 0x110   : > { %v529_v16 = vpop.f32.mrf.mxu0  ;;  %v570_v18 = vpop.f32.mrf.mxu1 }
 0x111   : > { %v530_v17 = vadd.f32 %v529_v16, %v247_v0  ;;  %v571_v19 = vadd.f32 %v570_v18, %v247_v0 }
 0x112   : > { %v531_v20 = vpop.f32.mrf.mxu0  ;;  %v572_v22 = vpop.f32.mrf.mxu1 }
 0x113   : > { %581 = vst [vmem:[%s206_s9 + $0x20] sm:$0xff] %v530_v17  ;;  %v532_v21 = vadd.f32 %v531_v20, %v247_v0  ;;  %583 = vst [vmem:[%s206_s9 + $0x30] sm:$0xff] %v571_v19  ;;  %v573_v23 = vadd.f32 %v572_v22, %v247_v0 }
 0x114   : > { %v533_v24 = vpop.f32.mrf.mxu0  ;;  %v574_v25 = vpop.f32.mrf.mxu1 }
 0x115   : > { %582 = vst [vmem:[%s206_s9 + $0x28] sm:$0xff] %v532_v21  ;;  %584 = vst [vmem:[%s206_s9 + $0x38] sm:$0xff] %v573_v23 }
 0x116   : > { %v534_v26 = vpop.f32.mrf.mxu0  ;;  %v575_v27 = vpop.f32.mrf.mxu1 }
 0x117   : > { %846 = shalt.err (!%p843_p6)
}
 0x118   : > { %s847_s4 = scalar_lea.hbm %s1086_s21, 1024  ;;  %s851_s5 = scalar_lea.hbm %s1137_s3, 2048 }
 0x119   : > { %p848_p7 = scmp.ne.s32.totalorder %s1086_s21, %s847_s4  ;;  %p852_p13 = scmp.lt.s32.totalorder %s1086_s21, %s1137_s3 }
 0x11a   : > { %p853_p2 = scmp.lt.s32.totalorder %s851_s5, %s847_s4 }
 0x11b   : > { %p849_p10 = pnand %p848_p7, %p991_p9 }
 0x11c   : > { %p854_p8 = por %p853_p2, %p852_p13 }
 0x11d   : > { %p850_p4 = pneg %p849_p10 }
 0x11f   : > { %p855_p12 = pnand %p854_p8, %p850_p4 }
 0x121   : > { %858 = shalt.err (!%p855_p12)
}
 0x122   : > { %741 = dma.vmem_to_hbm [thread:$0]  (%p991_p9), %s1088_s11, 1024, %s1086_s21, %s586_s15  }
 0x123 PF: > { %s614_s8 = sand.u32 1, %s893_s12   ;;  %p1143_p0 = scmp.ge.s32.totalorder %s913_s17, 2 }
 0x124   : > { %s615_s9 = scalar_lea.sflag [#allocation4], %s614_s8 }
 0x125   : > { %p748_p1 = pnand %p1143_p0, %p998_p11 }
 0x127   : > { %p749_p3 = pneg %p748_p1 }
 0x129   : > { %888 = dma.done.wait (%p749_p3), %s615_s9, 1024  }
 0x12a   : > { %890 = vsyncadd (%p749_p3), %s615_s9, 4294966272  ;;  %s19_s17 = sadd.s32 1, %s913_s17   ;;  %s1144_s12 = smov %s897_s13 }
 0x12b   : > { %p16_p5 = scmp.ge.s32.totalorder %s19_s17, 4   ;;  %s1145_s13 = smov %s901_s14 }
 0x12c   : > { %s1146_s14 = smov %s996_s26  ;;  %s1147_s15 = smov %s909_s16 }
 0x12d   : > { %s1148_s16 = smov %s1150_s20  ;;  %18 = sbr.rel (!%p16_p5) target bundleno = 6 (0x6), region = 77 }
 0x132   :  { %620 = vsyncpa [#allocation3], 1 }
 0x133   :  { %622 = vsyncpa [#allocation3 + $0x1], 1 }
 0x134   :  { %623 = vsyncpa [#allocation4], 1 }
 0x135   :  { %625 = vsyncpa [#allocation4 + $0x1], 1 }

</bundles_post_ra>
